<compile_context>
chip_gen: v7x
topology: tpu7x:2x2x1
jax: 0.10.0
libtpu: 0.0.40
codegen_flags: <defaults>
</compile_context>

<pallas_src>
import functools
from typing import NamedTuple

import jax
import jax.numpy as jnp
from jax import lax
from jax.experimental import pallas as pl
from jax.experimental.pallas import tpu as pltpu


def _round_up(x, m):
    return ((x + m - 1) // m) * m


def _cdiv(a, b):
    return -(-a // b)


class LowFeatureParams(NamedTuple):
    table: jax.Array          # (k_pad, out_pad) f32: [I_cont | block-diagonal embeddings | 0]
    row_offsets: tuple        # per-feature row offset within the vocab lanes (python ints)
    vocabs: tuple             # true vocab size per categorical feature
    cont_dim: int
    cate_num: int
    emb_dim: int
    total_vocab: int
    out_dim: int              # cont_dim + cate_num * emb_dim (true output width)
    out_pad: int              # out_dim rounded up to a multiple of 128 (lane-dense)
    k_pad: int                # cont_dim + total_vocab rounded up to a multiple of 8


def build_low_feature_params(emb_tables_list, cont_dim):
    """Build the stacked block-diagonal table ONCE (hoisted out of the forward path).

    Layout:
      rows [0, cont_dim)                         cols [0, cont_dim)                -> identity
      rows [cont_dim+off_i, cont_dim+off_i+V_i)  cols [cont_dim+i*E, cont_dim+(i+1)*E) -> table_i
    so a single (lhs @ table) reproduces [x_cont | emb_0 | ... | emb_{n-1} | zero padding].
    """
    assert len(emb_tables_list) >= 1
    cate_num = len(emb_tables_list)
    emb_dim = int(emb_tables_list[0].shape[1])
    vocabs = tuple(int(t.shape[0]) for t in emb_tables_list)
    total_vocab = sum(vocabs)

    out_dim = cont_dim + cate_num * emb_dim
    out_pad = _round_up(out_dim, 128)                 # lane-dense output width
    k_pad = _round_up(cont_dim + total_vocab, 8)      # sublane-aligned contraction dim

    row_offsets = []
    acc = 0
    for v in vocabs:
        row_offsets.append(acc)
        acc += v

    table = jnp.zeros((k_pad, out_pad), dtype=jnp.float32)
    table = table.at[:cont_dim, :cont_dim].set(jnp.eye(cont_dim, dtype=jnp.float32))
    for i, t in enumerate(emb_tables_list):
        r0 = cont_dim + row_offsets[i]
        c0 = cont_dim + i * emb_dim
        table = table.at[r0:r0 + vocabs[i], c0:c0 + emb_dim].set(t.astype(jnp.float32))

    return LowFeatureParams(
        table=table, row_offsets=tuple(row_offsets), vocabs=vocabs,
        cont_dim=cont_dim, cate_num=cate_num, emb_dim=emb_dim,
        total_vocab=total_vocab, out_dim=out_dim, out_pad=out_pad, k_pad=k_pad)


def _low_feature_kernel(xcont_ref, xcate_ref, table_ref, out_ref, *,
                        cate_num, row_offsets, vocabs, vocab_lanes):
    tb = xcont_ref.shape[0]

    # One-hot over the vocab lanes, built as an OR of integer equality masks (row ranges of the
    # stacked table are disjoint).  Single cast to f32 happens only at the MXU boundary.
    v_iota = lax.broadcasted_iota(jnp.int32, (tb, vocab_lanes), 1)
    hot = None
    for i in range(cate_num):  # static, tiny loop: cate_num compares + ORs on the VPU
        idx = xcate_ref[:, i].astype(jnp.int32)
        idx = jnp.clip(idx, 0, vocabs[i] - 1)          # guard OOB indices inside table i
        gidx = idx.reshape(tb, 1) + row_offsets[i]
        m = v_iota == gidx
        hot = m if hot is None else (hot | m)

    # lhs = [x_cont | one-hot]; the table's leading identity block passes x_cont through the
    # matmul, so the output is produced by a single MXU contraction and a single aligned store.
    lhs = jnp.concatenate(
        [xcont_ref[...].astype(jnp.float32), hot.astype(jnp.float32)], axis=1)

    # Explicit fp32 contract precision: one-hot/identity lhs * f32 table stays exact (no silent
    # bf16 rounding of embedding rows or of the folded continuous values).
    out = jnp.dot(lhs, table_ref[...],
                  precision=jax.lax.Precision.HIGHEST,
                  preferred_element_type=jnp.float32)

    out_ref[...] = out.astype(out_ref.dtype)


def low_feature_forward(x_cont, x_cate, params: LowFeatureParams, *,
                        block_b=None, out_dtype=jnp.float32,
                        even_grid=True, trim=True):
    """x_cont: (B, cont_dim) float; x_cate: (B, cate_num) int; params from build_low_feature_params.

    If trim=False the padded (B_pad, out_pad) slab is returned (rows [B, B_pad) and lanes
    [out_dim, out_pad) are zero/padding) so downstream consumers can fuse the slice and avoid an
    extra pass over the output.
    """
    B, cont_dim = x_cont.shape
    _, cate_num = x_cate.shape
    assert cont_dim == params.cont_dim and cate_num == params.cate_num

    # --- Batch tiling: big tiles (per-step overhead ~0.35us), even >=2-step grid for v7x's 2 TCs.
    if block_b is None:
        target = 1024                       # review: 512 -> 1024+ moves to ~86%+ of HBM roofline
        steps = _cdiv(B, target)
        if B > 8:
            steps = max(steps, 2)           # >=2 steps: pipeline overlap + megacore sharding
    else:
        block_b = max(8, _round_up(block_b, 8))
        steps = _cdiv(B, block_b)
    if even_grid and steps > 1 and steps % 2 == 1:
        steps += 1                          # even grid -> both v7x TensorCores get equal work
    if block_b is None:
        block_b = max(8, _round_up(_cdiv(B, steps), 8))
    B_pad = steps * block_b

    x_cont_p = x_cont.astype(jnp.float32)
    x_cate_p = x_cate.astype(jnp.int32)
    if B_pad != B:
        x_cont_p = jnp.pad(x_cont_p, ((0, B_pad - B), (0, 0)))
        x_cate_p = jnp.pad(x_cate_p, ((0, B_pad - B), (0, 0)))  # index 0 is always valid

    k_pad, out_pad = params.k_pad, params.out_pad
    vocab_lanes = k_pad - cont_dim

    # --- VMEM budget: actual working set * 1.5 headroom, capped at 48 MiB (safe on v5e/v6e/v7x;
    # on v5e/v6e's 128 MiB this could be raised toward ~96 MiB for very large tables/tiles).
    f32 = 4
    lane_k = max(_round_up(k_pad, 128), 128)
    bytes_needed = (
        2 * block_b * cont_dim * f32                       # x_cont tiles (double-buffered)
        + 2 * block_b * cate_num * f32                     # x_cate tiles (double-buffered)
        + 2 * k_pad * out_pad * f32                        # table (grid-invariant; allocated 2x)
        + 2 * block_b * out_pad * jnp.dtype(out_dtype).itemsize   # output tiles
        + 3 * block_b * lane_k * f32                       # in-kernel lhs / one-hot temporaries
    )
    vmem_limit = int(min(48 << 20, max(8 << 20, int(1.5 * bytes_needed))))

    kernel = functools.partial(
        _low_feature_kernel,
        cate_num=cate_num,
        row_offsets=params.row_offsets,
        vocabs=params.vocabs,
        vocab_lanes=vocab_lanes)

    out = pl.pallas_call(
        kernel,
        out_shape=jax.ShapeDtypeStruct((B_pad, out_pad), out_dtype),
        grid_spec=pltpu.PrefetchScalarGridSpec(
            num_scalar_prefetch=0,
            grid=(steps,),
            in_specs=[
                pl.BlockSpec((block_b, cont_dim), lambda b: (b, 0)),
                pl.BlockSpec((block_b, cate_num), lambda b: (b, 0)),
                # Grid-invariant operand: constant index_map -> no re-DMA across steps.
                pl.BlockSpec((k_pad, out_pad), lambda b: (0, 0)),
            ],
            out_specs=pl.BlockSpec((block_b, out_pad), lambda b: (b, 0)),
        ),
        compiler_params=pltpu.CompilerParams(
            dimension_semantics=("parallel",),
            vmem_limit_bytes=vmem_limit),
    )(x_cont_p, x_cate_p, params.table)

    if trim:
        # NOTE: this slice is an extra XLA pass over the output; consumers that can read the
        # padded layout should pass trim=False and fuse the slice into the next op instead.
        return out[:B, :params.out_dim]
    return out


def reference_forward(x_cont, x_cate, emb_tables_list):
    parts = [x_cont.astype(jnp.float32)]
    for i, tbl in enumerate(emb_tables_list):
        parts.append(jnp.take(tbl, x_cate[:, i].astype(jnp.int32), axis=0))
    return jnp.concatenate(parts, axis=1)


if __name__ == "__main__":
    # Module config (synthetic, deterministic): cont dim 4, three categorical vars with
    # vocab sizes [5, 7, 11], embedding_dim=8.
    input_dict = {"cont": 4, "cate": [5, 7, 11]}
    embedding_dim = 8
    B = 200  # not a tile multiple -> exercises batch padding; auto tiling gives an even 2-step grid

    cont_dim = input_dict["cont"]
    vocabs = input_dict["cate"]
    cate_num = len(vocabs)

    key = jax.random.PRNGKey(0)
    k_cont, k_cate, *k_emb = jax.random.split(key, 2 + cate_num)

    # Deterministic "parameters": each nn.Embedding(cdim, 8) is N(0,1)-initialized.
    emb_tables_list = [
        jax.random.normal(k_emb[i], (vocabs[i], embedding_dim), dtype=jnp.float32)
        for i in range(cate_num)
    ]

    x_cont = jax.random.normal(k_cont, (B, cont_dim), dtype=jnp.float32)
    ks = jax.random.split(k_cate, cate_num)
    cate_cols = [
        jax.random.randint(ks[i], (B,), 0, vocabs[i], dtype=jnp.int32)
        for i in range(cate_num)
    ]
    x_cate = jnp.stack(cate_cols, axis=1)  # (B, cate_num) int32

    # Stacked table built ONCE, outside the forward path (hoisted parameter transform).
    params = build_low_feature_params(emb_tables_list, cont_dim)

    y = low_feature_forward(x_cont, x_cate, params)
    y = jax.block_until_ready(y)

    y_ref = reference_forward(x_cont, x_cate, emb_tables_list)
    assert y.shape == (B, cont_dim + cate_num * embedding_dim), y.shape
    assert jnp.allclose(y, y_ref, atol=1e-5, rtol=1e-5), "mismatch vs reference"

    print("KERNEL_OK")
</pallas_src>

<mosaic_0001>
module attributes {stable_mosaic.version = 11 : i64} {
  func.func @_low_feature_kernel(%arg0: i32, %arg1: memref<104x4xf32, #tpu.memory_space<vmem>>, %arg2: memref<104x3xi32, #tpu.memory_space<vmem>>, %arg3: memref<32x128xf32, #tpu.memory_space<vmem>>, %arg4: memref<104x128xf32, #tpu.memory_space<vmem>>) attributes {dimension_semantics = [#tpu.dimension_semantics<parallel>], iteration_bounds = array<i64: 2>, scalar_prefetch = 0 : i64, scratch_operands = 0 : i64, tpu.core_type = #tpu.core_type<tc>, window_params = [{transform_indices = @transform_0, window_bounds = array<i64: 104, 4>}, {transform_indices = @transform_1, window_bounds = array<i64: 104, 3>}, {pipeline_mode = #tpu.pipeline_mode<synchronous>, transform_indices = @transform_2, window_bounds = array<i64: 32, 128>}, {transform_indices = @transform_3, window_bounds = array<i64: 104, 128>}]} {
    %0 = tpu.iota {dimensions = array<i32: 1>} : vector<104x28xi32>
    %c0 = arith.constant 0 : index
    %c0_0 = arith.constant 0 : index
    %1 = vector.load %arg2[%c0, %c0_0] : memref<104x3xi32, #tpu.memory_space<vmem>>, vector<104x1xi32>
    %2 = vector.shape_cast %1 : vector<104x1xi32> to vector<104xi32>
    %c0_i32 = arith.constant 0 : i32
    %c4_i32 = arith.constant 4 : i32
    %3 = vector.broadcast %c0_i32 : i32 to vector<104xi32>
    %4 = arith.maxsi %3, %2 : vector<104xi32>
    %5 = vector.broadcast %c4_i32 : i32 to vector<104xi32>
    %6 = arith.minsi %5, %4 : vector<104xi32>
    %7 = vector.shape_cast %6 : vector<104xi32> to vector<104x1xi32>
    %c0_i32_1 = arith.constant 0 : i32
    %8 = vector.broadcast %c0_i32_1 : i32 to vector<104x1xi32>
    %9 = arith.addi %7, %8 : vector<104x1xi32>
    %10 = vector.broadcast %9 : vector<104x1xi32> to vector<104x28xi32>
    %11 = arith.cmpi eq, %0, %10 : vector<104x28xi32>
    %c0_2 = arith.constant 0 : index
    %c1 = arith.constant 1 : index
    %12 = vector.load %arg2[%c0_2, %c1] : memref<104x3xi32, #tpu.memory_space<vmem>>, vector<104x1xi32>
    %13 = vector.shape_cast %12 : vector<104x1xi32> to vector<104xi32>
    %c0_i32_3 = arith.constant 0 : i32
    %c6_i32 = arith.constant 6 : i32
    %14 = vector.broadcast %c0_i32_3 : i32 to vector<104xi32>
    %15 = arith.maxsi %14, %13 : vector<104xi32>
    %16 = vector.broadcast %c6_i32 : i32 to vector<104xi32>
    %17 = arith.minsi %16, %15 : vector<104xi32>
    %18 = vector.shape_cast %17 : vector<104xi32> to vector<104x1xi32>
    %c5_i32 = arith.constant 5 : i32
    %19 = vector.broadcast %c5_i32 : i32 to vector<104x1xi32>
    %20 = arith.addi %18, %19 : vector<104x1xi32>
    %21 = vector.broadcast %20 : vector<104x1xi32> to vector<104x28xi32>
    %22 = arith.cmpi eq, %0, %21 : vector<104x28xi32>
    %23 = arith.ori %11, %22 : vector<104x28xi1>
    %c0_4 = arith.constant 0 : index
    %c2 = arith.constant 2 : index
    %24 = vector.load %arg2[%c0_4, %c2] : memref<104x3xi32, #tpu.memory_space<vmem>>, vector<104x1xi32>
    %25 = vector.shape_cast %24 : vector<104x1xi32> to vector<104xi32>
    %c0_i32_5 = arith.constant 0 : i32
    %c10_i32 = arith.constant 10 : i32
    %26 = vector.broadcast %c0_i32_5 : i32 to vector<104xi32>
    %27 = arith.maxsi %26, %25 : vector<104xi32>
    %28 = vector.broadcast %c10_i32 : i32 to vector<104xi32>
    %29 = arith.minsi %28, %27 : vector<104xi32>
    %30 = vector.shape_cast %29 : vector<104xi32> to vector<104x1xi32>
    %c12_i32 = arith.constant 12 : i32
    %31 = vector.broadcast %c12_i32 : i32 to vector<104x1xi32>
    %32 = arith.addi %30, %31 : vector<104x1xi32>
    %33 = vector.broadcast %32 : vector<104x1xi32> to vector<104x28xi32>
    %34 = arith.cmpi eq, %0, %33 : vector<104x28xi32>
    %35 = arith.ori %23, %34 : vector<104x28xi1>
    %c0_6 = arith.constant 0 : index
    %c0_7 = arith.constant 0 : index
    %36 = vector.load %arg1[%c0_6, %c0_7] : memref<104x4xf32, #tpu.memory_space<vmem>>, vector<104x4xf32>
    %37 = arith.extui %35 : vector<104x28xi1> to vector<104x28xi32>
    %38 = arith.sitofp %37 : vector<104x28xi32> to vector<104x28xf32>
    %39 = tpu.concatenate %36, %38 in 1 : vector<104x4xf32>, vector<104x28xf32> -> vector<104x32xf32>
    %c0_8 = arith.constant 0 : index
    %c0_9 = arith.constant 0 : index
    %40 = vector.load %arg3[%c0_8, %c0_9] : memref<32x128xf32, #tpu.memory_space<vmem>>, vector<32x128xf32>
    %cst = arith.constant dense<0.000000e+00> : vector<104x128xf32>
    %41 = tpu.matmul %39, %40, %cst {dimension_numbers = #tpu.dot_dimension_numbers<[1], [0], [0], [1], [0, 0, 1, 1], [], []>, precision = #tpu.contract_precision<fp32>} : vector<104x32xf32>, vector<32x128xf32>, vector<104x128xf32> -> vector<104x128xf32>
    %c0_10 = arith.constant 0 : index
    %c0_11 = arith.constant 0 : index
    %42 = vector.load %arg4[%c0_10, %c0_11] : memref<104x128xf32, #tpu.memory_space<vmem>>, vector<104x128xf32>
    tpu.vector_store %arg4[%c0_10, %c0_11], %41 {strides = array<i32>} : memref<104x128xf32, #tpu.memory_space<vmem>>, vector<104x128xf32>,
    return
  }
  func.func @transform_0(%arg0: i32) -> (i32, i32) {
    %c0_i32 = arith.constant 0 : i32
    %c0_i32_0 = arith.constant 0 : i32
    return %arg0, %c0_i32 : i32, i32
  }
  func.func @transform_1(%arg0: i32) -> (i32, i32) {
    %c0_i32 = arith.constant 0 : i32
    %c0_i32_0 = arith.constant 0 : i32
    return %arg0, %c0_i32 : i32, i32
  }
  func.func @transform_2(%arg0: i32) -> (i32, i32) {
    %c0_i32 = arith.constant 0 : i32
    %c0_i32_0 = arith.constant 0 : i32
    %c0_i32_1 = arith.constant 0 : i32
    return %c0_i32, %c0_i32_0 : i32, i32
  }
  func.func @transform_3(%arg0: i32) -> (i32, i32) {
    %c0_i32 = arith.constant 0 : i32
    %c0_i32_0 = arith.constant 0 : i32
    return %arg0, %c0_i32 : i32, i32
  }
}

</mosaic_0001>

<bundles_post_ra>
// kernel: tpu_custom_call.1
= control target key start
LH: loop header
LB: loop body
LE: loop exit
PB: predicated region body
PF: predicated region fallthrough
CT: control target
= control target key end

     0   :  { %8 = vsyncpa [#allocation3], 0  ;;  %s3205_s0 = inlined_call_operand.vmem [shape: f32[208,4], index: 0, kind: input, shape index: {}]   ;;  %s3206_s1 = inlined_call_operand.vmem [shape: s32[208,3], index: 1, kind: input, shape index: {}]   ;;  %s3207_s2 = inlined_call_operand.vmem [shape: f32[32,128], index: 2, kind: input, shape index: {}]   ;;  %s3208_s3 = inlined_call_operand.hbm [shape: f32[208,128], index: 3, kind: output, shape index: {}]  }
   0x1   :  { %10 = vsyncpa [#allocation3 + $0x1], 0  ;;  %s2502_s12 = smov 0   ;;  %s2504_s13 = smov 0  }
   0x2   :  { %s2506_s14 = smov 0   ;;  %s2508_s15 = smov 0  }
   0x3 LB: > { %s2523_s16 = sadd.s32 4294967295, %s2470_s15   ;;  %s1772_s17 = sadd.s32 4294967294, %s2470_s15   ;;  %s2470_s15 = sphi %s2508_s15, %s3214_s15   ;;  %s2466_s14 = sphi %s2506_s14, %s3213_s14   ;;  %s2462_s13 = sphi %s2504_s13, %s3212_s13   ;;  %s2458_s12 = sphi %s2502_s12, %s3211_s12  }
   0x4   : > { %s2527_s18 = sadd.s32 1, %s2470_s15   ;;  %s96_s19 = sadd.s32 1, %s2466_s14 }
   0x5   : > { %s93_s20 = ssub.s32 %s2470_s15, %s2527_s18  ;;  %p106_p0 = scmp.ne.s32.totalorder %s2466_s14, %s2462_s13 }
   0x6   : > { %p94_p1 = scmp.eq.s32.totalorder %s93_s20, 0  ;;  %p107_p2 = scmp.eq.s32.totalorder %s2523_s16, 1 }
   0x7   : > { %p112_p3 = scmp.ne.s32.totalorder %s2462_s13, %s2458_s12  ;;  %p113_p4 = scmp.eq.s32.totalorder %s1772_s17, 1 }
   0x8   : > { %s2538_s21 = scalar_select %p94_p1, %s2466_s14, %s96_s19  }
   0x9   : > { %p2540_p5 = por %p107_p2, %p106_p0  ;;  %p2544_p6 = por %p113_p4, %p112_p3 }
   0xa   : > { %p1775_p7 = scmp.ge.s32.totalorder %s2470_s15, 1  ;;  %p152_p8 = scmp.lt.s32.totalorder %s2470_s15, 3 }
   0xc   : > { %p153_p9 = pnand %p1775_p7, %p152_p8 }
   0xd   : > { %s181_s24 = smul.u32 (!%p153_p9), 13, %s2523_s16  ;;  %v2472_v0 = vmov (!%p153_p9), 0   ;;  %v2473_v1 = vmov (!%p153_p9), 1   ;;  %v2474_v24 = vmov (!%p153_p9), 2   ;;  %s2478_s10 = smov (!%p153_p9), 4  }
   0xe   : > { %156 = sbr.rel (%p153_p9) target bundleno = 729 (0x2d9), region = 32  ;;  %2381 = vset.pattern.permute.xlu1 (!%p153_p9), %v2472_v0  ;;  %2382 = vset.pattern.permute.xlu0 (!%p153_p9), %v2473_v1  ;;  %s178_s20 = sand.u32 (!%p153_p9), 1, %s2462_s13  }
   0xf   : > { %p182_p10 = scmp.lt.s32.totalorder (!%p153_p9), %s181_s24, 25  ;;  %s1794_s26 = smul.u32 (!%p153_p9), 1664, %s2523_s16 }
  0x10   : > { %s3164_s16 = scalar_lea.sflag (!%p153_p9), [#allocation3], %s178_s20  ;;  %s2479_s5 = smov (!%p153_p9), [#allocation2]  }
  0x11   : > { %s3157_s30 = scalar_lea.hbm (!%p153_p9), %s3208_s3, %s1794_s26  ;;  %s2412_s6 = sshll.u32 (!%p153_p9), %s2479_s5, 4  ;;  %s2413_s6 = int_to_ptr.vmem [resolvable:$false] %s2412_s6 }
  0x12   : > { %s2414_s7 = scalar_lea.vmem (!%p153_p9), %s2413_s6, 3328 }
  0x15   : > { %s3216_s24 = smov (!%p182_p10, %s181_s24), 25 }
  0x16   : > { %s1776_s25 = sshll.u32 %s3216_s24, 3  ;;  %s2332_s24 = smul.u32 104, %s178_s20 }
  0x17   : > { %s2561_s28 = scalar_lea.vmem %s3206_s1, %s1776_s25  ;;  %s2781_s19 = scalar_lea.vmem %s3205_s0, %s1776_s25 }
  0x18   : > { %v197_v2 = vld [vmem:[%s2561_s28 + $0x8] sm:$0xff]  ;;  %v196_v3 = vld [vmem:[%s2561_s28] sm:$0xff]  ;;  %v198_v4 = vld [vmem:[%s2561_s28 + $0x10] sm:$0xff]  ;;  %s3138_s25 = scalar_lea.vmem [#allocation2], %s2332_s24 }
  0x19   : > { %vm211_vm0 = vcmp.gt.s32.totalorder %v197_v2, 0  ;;  %vm209_vm1 = vcmp.gt.s32.totalorder %v196_v3, 0  ;;  %vm213_vm2 = vcmp.gt.s32.totalorder %v198_v4, 0  ;;  %v199_v5 = vld [vmem:[%s2561_s28 + $0x18] sm:$0xff]  ;;  %v200_v9 = vld [vmem:[%s2561_s28 + $0x20] sm:$0xff]  ;;  %v201_v20 = vld [vmem:[%s2561_s28 + $0x28] sm:$0xff] }
  0x1a   : > { %v212_v6 = vsel %vm211_vm0, %v197_v2, 0  ;;  %v210_v7 = vsel %vm209_vm1, %v196_v3, 0  ;;  %v2567_v8 = vsel %vm213_vm2, %v198_v4, 0  ;;  %vm215_vm3 = vcmp.gt.s32.totalorder %v199_v5, 0  ;;  %v202_v25 = vld [vmem:[%s2561_s28 + $0x30] sm:$0xff]  ;;  %v203_v37 = vld [vmem:[%s2561_s28 + $0x38] sm:$0xff] }
  0x1b   : > { %vm237_vm4 = vcmp.lt.s32.totalorder %v212_v6, 4  ;;  %vm313_vm5 = vcmp.lt.s32.totalorder %v210_v7, 6  ;;  %vm239_vm6 = vcmp.lt.s32.totalorder %v2567_v8, 4  ;;  %v216_v10 = vsel %vm215_vm3, %v199_v5, 0  ;;  %v204_v41 = vld [vmem:[%s2561_s28 + $0x40] sm:$0xff]  ;;  %v205_v46 = vld [vmem:[%s2561_s28 + $0x48] sm:$0xff] }
  0x1c   : > { %v238_v11 = vsel %vm237_vm4, %v212_v6, 4  ;;  %v314_v12 = vsel %vm313_vm5, %v210_v7, 6  ;;  %vm319_vm7 = vcmp.lt.s32.totalorder %v216_v10, 6  ;;  %vm417_vm8 = vcmp.lt.s32.totalorder %v210_v7, 10  ;;  %v206_v59 = vld [vmem:[%s2561_s28 + $0x50] sm:$0xff]  ;;  %v207_v61 = vld [vmem:[%s2561_s28 + $0x58] sm:$0xff] }
  0x1d   : > { %265 = vperm.xlu1 %2381, %v238_v11   ;;  %v339_v13 = vadd.s32 5, %v314_v12  ;;  %v320_v14 = vsel %vm319_vm7, %v216_v10, 6  ;;  %vm217_vm9 = vcmp.gt.s32.totalorder %v200_v9, 0  ;;  %v240_v15 = vsel %vm239_vm6, %v2567_v8, 4  ;;  %v208_v4 = vld [vmem:[%s2561_s28 + $0x60] sm:$0xff]  ;;  %s1698_s27 = sshll.u32 %s3138_s25, 4  ;;  %s3159_s27 = int_to_ptr.vmem [resolvable:$true] %s1698_s27 }
  0x1e   : > { %v2572_v16 = vsel %vm217_vm9, %v200_v9, 0  ;;  %v342_v17 = vadd.s32 5, %v320_v14  ;;  %v418_v18 = vsel %vm417_vm8, %v210_v7, 10  ;;  %vm315_vm11 = vcmp.lt.s32.totalorder %v212_v6, 6  ;;  %s2408_s4 = scalar_lea.vmem %s3159_s27, 1664  ;;  %p2415_p0 = scmp.lt.s32.totalorder %s3159_s27, %s2413_s6 }
  0x1f   : > { %353 = vperm.xlu0 %2382, %v339_v13   ;;  %vm321_vm10 = vcmp.lt.s32.totalorder %v2572_v16, 6  ;;  %v443_v21 = vadd.s32 12, %v418_v18  ;;  %v316_v23 = vsel %vm315_vm11, %v212_v6, 6  ;;  %vm219_vm12 = vcmp.gt.s32.totalorder %v201_v20, 0  ;;  %p2409_p11 = scmp.ne.s32.totalorder %s3159_s27, %s2408_s4  ;;  %p2416_p1 = scmp.lt.s32.totalorder %s2414_s7, %s2408_s4 }
  0x20   : > { %v322_v19 = vsel %vm321_vm10, %v2572_v16, 6  ;;  %vm317_vm13 = vcmp.lt.s32.totalorder %v2567_v8, 6  ;;  %vm235_vm14 = vcmp.lt.s32.totalorder %v210_v7, 4  ;;  %v340_v26 = vadd.s32 5, %v316_v23 }
  0x21   : > { %268 = vperm.xlu1 %2381, %v240_v15   ;;  %v343_v22 = vadd.s32 5, %v322_v19  ;;  %v2580_v27 = vsel %vm219_vm12, %v201_v20, 0  ;;  %v318_v28 = vsel %vm317_vm13, %v2567_v8, 6  ;;  %vm221_vm15 = vcmp.gt.s32.totalorder %v202_v25, 0  ;;  %p2410_p12 = pnand %p2409_p11, %p2540_p5  ;;  %p2417_p2 = por %p2416_p1, %p2415_p0 }
  0x22   : > { %v236_v29 = vsel %vm235_vm14, %v210_v7, 4  ;;  %vm245_vm0 = vcmp.lt.s32.totalorder %v2580_v27, 4  ;;  %v341_v30 = vadd.s32 5, %v318_v28  ;;  %v2586_v31 = vsel %vm221_vm15, %v202_v25, 0 }
  0x23   : > { %362 = vperm.xlu0 %2382, %v342_v17   ;;  %v246_v32 = vsel %vm245_vm0, %v2580_v27, 4  ;;  %vm241_vm1 = vcmp.lt.s32.totalorder %v216_v10, 4  ;;  %vm247_vm2 = vcmp.lt.s32.totalorder %v2586_v31, 4  ;;  %vm423_vm3 = vcmp.lt.s32.totalorder %v216_v10, 10  ;;  %p2411_p13 = pneg %p2410_p12 }
  0x24   : > { %vm419_vm4 = vcmp.lt.s32.totalorder %v212_v6, 10  ;;  %v242_v33 = vsel %vm241_vm1, %v216_v10, 4  ;;  %v248_v34 = vsel %vm247_vm2, %v2586_v31, 4  ;;  %v424_v35 = vsel %vm423_vm3, %v216_v10, 10 }
  0x25   : > { %2383 = vset.pattern.permute.xlu1 %v2474_v24  ;;  %v420_v36 = vsel %vm419_vm4, %v212_v6, 10  ;;  %vm421_vm5 = vcmp.lt.s32.totalorder %v2567_v8, 10  ;;  %v446_v38 = vadd.s32 12, %v424_v35  ;;  %vm429_vm6 = vcmp.lt.s32.totalorder %v2586_v31, 10  ;;  %p2418_p3 = pnand %p2417_p2, %p2411_p13 }
  0x26   : > { %457 = vperm.xlu1 %2383, %v443_v21   ;;  %v444_v39 = vadd.s32 12, %v420_v36  ;;  %v422_v40 = vsel %vm421_vm5, %v2567_v8, 10  ;;  %vm223_vm7 = vcmp.gt.s32.totalorder %v203_v37, 0  ;;  %vm243_vm8 = vcmp.lt.s32.totalorder %v2572_v16, 4  ;;  %v627_v36 = vld [vmem:[%s3207_s2 + $0x8] sm:$0xff] }
  0x27   : > { %365 = vperm.xlu0 %2382, %v343_v22   ;;  %v445_v42 = vadd.s32 12, %v422_v40  ;;  %vm425_vm9 = vcmp.lt.s32.totalorder %v2572_v16, 10  ;;  %v430_v43 = vsel %vm429_vm6, %v2586_v31, 10  ;;  %v2602_v44 = vsel %vm223_vm7, %v203_v37, 0 }
  0x28   : > { %vm225_vm10 = vcmp.gt.s32.totalorder %v204_v41, 0  ;;  %v244_v45 = vsel %vm243_vm8, %v2572_v16, 4  ;;  %vm431_vm11 = vcmp.lt.s32.totalorder %v2602_v44, 10  ;;  %v426_v47 = vsel %vm425_vm9, %v2572_v16, 10 }
  0x29   : > { %v449_v48 = vadd.s32 12, %v430_v43  ;;  %v2609_v49 = vsel %vm225_vm10, %v204_v41, 0  ;;  %vm323_vm12 = vcmp.lt.s32.totalorder %v2580_v27, 6  ;;  %v432_v50 = vsel %vm431_vm11, %v2602_v44, 10 }
  0x2a   : > { %2384 = vset.pattern.permute.xlu1 %v2473_v1  ;;  %vm227_vm13 = vcmp.gt.s32.totalorder %v205_v46, 0  ;;  %v447_v51 = vadd.s32 12, %v426_v47  ;;  %vm329_vm14 = vcmp.lt.s32.totalorder %v2609_v49, 6  ;;  %v324_v52 = vsel %vm323_vm12, %v2580_v27, 6 }
  0x2b   : > { %356 = vperm.xlu1 %2384, %v340_v26   ;;  %2388 = vset.pattern.permute.xlu0 %v2472_v0  ;;  %v450_v53 = vadd.s32 12, %v432_v50  ;;  %v2615_v54 = vsel %vm227_vm13, %v205_v46, 0  ;;  %vm427_vm15 = vcmp.lt.s32.totalorder %v2580_v27, 10  ;;  %v330_v55 = vsel %vm329_vm14, %v2609_v49, 6 }
  0x2c   : > { %262 = vperm.xlu0 %2388, %v236_v29   ;;  %v344_v56 = vadd.s32 5, %v324_v52  ;;  %vm331_vm0 = vcmp.lt.s32.totalorder %v2615_v54, 6  ;;  %v428_v57 = vsel %vm427_vm15, %v2580_v27, 10  ;;  %v347_v58 = vadd.s32 5, %v330_v55 }
  0x2d   : > { %v332_v60 = vsel %vm331_vm0, %v2615_v54, 6  ;;  %vm325_vm1 = vcmp.lt.s32.totalorder %v2586_v31, 6  ;;  %v448_v62 = vadd.s32 12, %v428_v57  ;;  %vm229_vm2 = vcmp.gt.s32.totalorder %v206_v59, 0 }
  0x2e   : > { %v348_v63 = vadd.s32 5, %v332_v60  ;;  %v326_v2 = vsel %vm325_vm1, %v2586_v31, 6  ;;  %vm231_vm3 = vcmp.gt.s32.totalorder %v207_v61, 0  ;;  %v230_v3 = vsel %vm229_vm2, %v206_v59, 0 }
  0x2f   : > { %359 = vperm.xlu1 %2384, %v341_v30   ;;  %vm255_vm4 = vcmp.lt.s32.totalorder %v230_v3, 4  ;;  %v345_v5 = vadd.s32 5, %v326_v2  ;;  %v232_v6 = vsel %vm231_vm3, %v207_v61, 0  ;;  %vm233_vm5 = vcmp.gt.s32.totalorder %v208_v4, 0 }
  0x30   : > { %277 = vperm.xlu0 %2388, %v246_v32   ;;  %v256_v7 = vsel %vm255_vm4, %v230_v3, 4  ;;  %vm249_vm6 = vcmp.lt.s32.totalorder %v2602_v44, 4  ;;  %vm257_vm7 = vcmp.lt.s32.totalorder %v232_v6, 4  ;;  %vm327_vm8 = vcmp.lt.s32.totalorder %v2602_v44, 6 }
  0x31   : > { %vm439_vm9 = vcmp.lt.s32.totalorder %v232_v6, 10  ;;  %v234_v8 = vsel %vm233_vm5, %v208_v4, 0  ;;  %v250_v9 = vsel %vm249_vm6, %v2602_v44, 4  ;;  %v258_v10 = vsel %vm257_vm7, %v232_v6, 4 }
  0x32   : > { %v328_v11 = vsel %vm327_vm8, %v2602_v44, 6  ;;  %v440_v12 = vsel %vm439_vm9, %v232_v6, 10  ;;  %vm441_vm10 = vcmp.lt.s32.totalorder %v234_v8, 10  ;;  %vm251_vm11 = vcmp.lt.s32.totalorder %v2609_v49, 4 }
  0x33   : > { %2385 = vset.pattern.permute.xlu1 %v2472_v0  ;;  %v346_v13 = vadd.s32 5, %v328_v11  ;;  %v454_v14 = vadd.s32 12, %v440_v12  ;;  %v442_v15 = vsel %vm441_vm10, %v234_v8, 10  ;;  %vm433_vm12 = vcmp.lt.s32.totalorder %v2609_v49, 10 }
  0x34   : > { %271 = vperm.xlu1 %2385, %v242_v33   ;;  %280 = vperm.xlu0 %2388, %v248_v34   ;;  %v455_v16 = vadd.s32 12, %v442_v15  ;;  %v252_v17 = vsel %vm251_vm11, %v2609_v49, 4  ;;  %v434_v18 = vsel %vm433_vm12, %v2609_v49, 10  ;;  %vm253_vm13 = vcmp.lt.s32.totalorder %v2615_v54, 4 }
  0x35   : > { %v451_v19 = vadd.s32 12, %v434_v18  ;;  %vm435_vm14 = vcmp.lt.s32.totalorder %v2615_v54, 10  ;;  %v254_v20 = vsel %vm253_vm13, %v2615_v54, 4  ;;  %vm333_vm15 = vcmp.lt.s32.totalorder %v230_v3, 6 }
  0x36   : > { %v436_v21 = vsel %vm435_vm14, %v2615_v54, 10  ;;  %v334_v23 = vsel %vm333_vm15, %v230_v3, 6  ;;  %vm437_vm0 = vcmp.lt.s32.totalorder %v230_v3, 10  ;;  %vm335_vm1 = vcmp.lt.s32.totalorder %v232_v6, 6 }
  0x37   : > { %v452_v22 = vadd.s32 12, %v436_v21  ;;  %v349_v25 = vadd.s32 5, %v334_v23  ;;  %v438_v26 = vsel %vm437_vm0, %v230_v3, 10  ;;  %v336_v28 = vsel %vm335_vm1, %v232_v6, 6 }
  0x38   : > { %2386 = vset.pattern.permute.xlu1 %v2474_v24  ;;  %2392 = vset.pattern.permute.xlu0 %v2474_v24  ;;  %v453_v27 = vadd.s32 12, %v438_v26  ;;  %v350_v29 = vadd.s32 5, %v336_v28  ;;  %vm259_vm2 = vcmp.lt.s32.totalorder %v234_v8, 4  ;;  %vm337_vm3 = vcmp.lt.s32.totalorder %v234_v8, 6 }
  0x39   : > { %466 = vperm.xlu1 %2386, %v446_v38   ;;  %460 = vperm.xlu0 %2392, %v444_v39   ;;  %v260_v30 = vsel %vm259_vm2, %v234_v8, 4  ;;  %v338_v31 = vsel %vm337_vm3, %v234_v8, 6  ;;  %v674_v38 = vand.u32 4294901760, %v627_v36  ;;  %v2475_v41 = vmov 0.0|0.0  }
  0x3a   : > { %v351_v32 = vadd.s32 5, %v338_v31  ;;  %2197 = vmatprep.subr.bf16.mxu0 %v2475_v41  ;;  %2179 = vmatprep.subr.bf16.mxu1 %v2475_v41  ;;  %vm2476_vm4 = vmmov 0  }
  0x3b   : > { %v2681_v49 = vsub.f32 %v627_v36, %v674_v38 }
  0x3d   : > { %2387 = vset.pattern.permute.xlu1 %v2472_v0  ;;  %463 = vperm.xlu0 %2392, %v445_v42   ;;  %v629_v42 = vld [vmem:[%s3207_s2 + $0x18] sm:$0xff]  ;;  %v879_v21 = vand.u32 4294901760, %v2681_v49 }
  0x3e   : > { %274 = vperm.xlu1 %2387, %v244_v45   ;;  %v680_v45 = vand.u32 4294901760, %v629_v42 }
  0x3f   : > { %v880_v23 = vsub.f32 %v2681_v49, %v879_v21 }
  0x40   : > { %v2687_v52 = vsub.f32 %v629_v42, %v680_v45 }
  0x41   : > { %475 = vperm.xlu0 %2392, %v449_v48  }
  0x42   : > { %2389 = vset.pattern.permute.xlu1 %v2474_v24 }
  0x43   : > { %469 = vperm.xlu1 %2389, %v447_v51  }
  0x45   : > { %478 = vperm.xlu0 %2392, %v450_v53   ;;  %v2477_v53 = vmov 0.0  }
  0x46   : > { %2046 = vmatprep.mubr.msk.f32.mxu0 %vm2476_vm4, %v2477_v53  ;;  %1905 = vmatprep.mubr.msk.f32.mxu1 %vm2476_vm4, %v2477_v53 }
  0x47   : > { %2390 = vset.pattern.permute.xlu1 %v2473_v1 }
  0x48   : > { %368 = vperm.xlu1 %2390, %v344_v56  }
  0x49   : > { %2397 = vset.pattern.permute.xlu0 %v2473_v1 }
  0x4a   : > { %377 = vperm.xlu0 %2397, %v347_v58  }
  0x4c   : > { %2391 = vset.pattern.permute.xlu1 %v2474_v24 }
  0x4d   : > { %472 = vperm.xlu1 %2391, %v448_v62  }
  0x4e   : > { %380 = vperm.xlu0 %2397, %v348_v63  }
  0x51   : > { %2393 = vset.pattern.permute.xlu1 %v2473_v1 }
  0x52   : > { %371 = vperm.xlu1 %2393, %v345_v5   ;;  %2401 = vset.pattern.permute.xlu0 %v2472_v0 }
  0x53   : > { %292 = vperm.xlu0 %2401, %v256_v7  }
  0x56   : > { %2394 = vset.pattern.permute.xlu1 %v2472_v0 }
  0x57   : > { %283 = vperm.xlu1 %2394, %v250_v9   ;;  %295 = vperm.xlu0 %2401, %v258_v10  }
  0x5b   : > { %2395 = vset.pattern.permute.xlu1 %v2473_v1  ;;  %2405 = vset.pattern.permute.xlu0 %v2474_v24 }
  0x5c   : > { %374 = vperm.xlu1 %2395, %v346_v13   ;;  %490 = vperm.xlu0 %2405, %v454_v14  }
  0x60   : > { %2396 = vset.pattern.permute.xlu1 %v2472_v0  ;;  %493 = vperm.xlu0 %2405, %v455_v16  }
  0x61   : > { %286 = vperm.xlu1 %2396, %v252_v17  }
  0x65   : > { %2398 = vset.pattern.permute.xlu1 %v2474_v24 }
  0x66   : > { %481 = vperm.xlu1 %2398, %v451_v19  }
  0x6a   : > { %2399 = vset.pattern.permute.xlu1 %v2472_v0 }
  0x6b   : > { %289 = vperm.xlu1 %2399, %v254_v20  }
  0x6f   : > { %2400 = vset.pattern.permute.xlu1 %v2474_v24 }
  0x70   : > { %484 = vperm.xlu1 %2400, %v452_v22  }
  0x74   : > { %2402 = vset.pattern.permute.xlu1 %v2473_v1 }
  0x75   : > { %383 = vperm.xlu1 %2402, %v349_v25  }
  0x79   : > { %2403 = vset.pattern.permute.xlu1 %v2474_v24  ;;  %v626_v24 = vld [vmem:[%s3207_s2] sm:$0xff] }
  0x7a   : > { %487 = vperm.xlu1 %2403, %v453_v27   ;;  %v671_v37 = vand.u32 4294901760, %v626_v24  ;;  %v881_v27 = vand.u32 4294901760, %v880_v23 }
  0x7c   : > { %v2663_v40 = vpack.c.bf16 %v674_v38, %v671_v37  ;;  %v2679_v48 = vsub.f32 %v626_v24, %v671_v37 }
  0x7e   : > { %2404 = vset.pattern.permute.xlu1 %v2473_v1  ;;  %2199 = vmatpush3.bf16.msra.mxu0 %v2663_v40  ;;  %v872_v20 = vand.u32 4294901760, %v2679_v48 }
  0x7f   : > { %386 = vperm.xlu1 %2404, %v350_v29   ;;  %2181 = vmatpush3.bf16.msra.mxu1 %v2663_v40 }
  0x80   : > { %2200 = vmatprep.subr.bf16.mxu0 %v2475_v41  ;;  %2182 = vmatprep.subr.bf16.mxu1 %v2475_v41  ;;  %v873_v22 = vsub.f32 %v2679_v48, %v872_v20  ;;  %v2741_v25 = vpack.c.bf16 %v879_v21, %v872_v20 }
  0x82   : > { %v874_v26 = vand.u32 4294901760, %v873_v22 }
  0x83   : > { %2406 = vset.pattern.permute.xlu1 %v2472_v0  ;;  %v194_v0 = vlaneseq }
  0x84   : > { %298 = vperm.xlu1 %2406, %v260_v30   ;;  %v2746_v29 = vpack.c.bf16 %v881_v27, %v874_v26  ;;  %v525_v27 = vld [vmem:[%s2781_s19 + $0x20] sm:$0xff] }
  0x85   : > { %v2677_v47 = vand.u32 127, %v194_v0 }
  0x88   : > { %2407 = vset.pattern.permute.xlu1 %v2473_v1  ;;  %v628_v1 = vld [vmem:[%s3207_s2 + $0x10] sm:$0xff] }
  0x89   : > { %389 = vperm.xlu1 %2407, %v351_v32   ;;  %v677_v44 = vand.u32 4294901760, %v628_v1 }
  0x8b   : > { %v2683_v50 = vpack.c.bf16 %v680_v45, %v677_v44  ;;  %v2685_v51 = vsub.f32 %v628_v1, %v677_v44 }
  0x8d   : > { %2202 = vmatpush3.bf16.msra.mxu0 %v2683_v50  ;;  %2184 = vmatpush3.bf16.msra.mxu1 %v2683_v50  ;;  %v886_v38 = vand.u32 4294901760, %v2685_v51 }
  0x8e   : > { %2185 = vmatprep.subr.bf16.mxu1 %v2475_v41  ;;  %2203 = vmatprep.subr.bf16.mxu0 %v2475_v41 }
  0x8f   : > { %v887_v42 = vsub.f32 %v2685_v51, %v886_v38 }
  0x9c   : > { %v266_v33 = vpop.permute.xlu1 %265 }
  0x9d   : > { %vm301_vm12 = vcmp.eq.s32.totalorder %v2677_v47, %v266_v33 }
  0x9e   : > { %v354_v34 = vpop.permute.xlu0 %353 }
  0x9f   : > { %vm391_vm5 = vcmp.eq.s32.totalorder %v2677_v47, %v354_v34 }
  0xa0   : > { %v269_v35 = vpop.permute.xlu1 %268 }
  0xa1   : > { %vm302_vm13 = vcmp.eq.s32.totalorder %v2677_v47, %v269_v35 }
  0xa2   : > { %v363_v39 = vpop.permute.xlu0 %362 }
  0xa3   : > { %vm394_vm14 = vcmp.eq.s32.totalorder %v2677_v47, %v363_v39  ;;  %v893_v39 = vand.u32 4294901760, %v2687_v52 }
  0xa5   : > { %v458_v43 = vpop.permute.xlu1 %457  ;;  %v2207_v44 = vpack.c.bf16 %v893_v39, %v886_v38 }
  0xa6   : > { %v366_v46 = vpop.permute.xlu0 %365  ;;  %vm495_vm7 = vcmp.eq.s32.totalorder %v2677_v47, %v458_v43  ;;  %v894_v43 = vsub.f32 %v2687_v52, %v893_v39 }
  0xaa   : > { %v357_v54 = vpop.permute.xlu1 %356 }
  0xab   : > { %v263_v55 = vpop.permute.xlu0 %262  ;;  %vm392_vm10 = vcmp.eq.s32.totalorder %v2677_v47, %v357_v54  ;;  %v895_v54 = vand.u32 4294901760, %v894_v43 }
  0xac   : > { %vm300_vm6 = vcmp.eq.s32.totalorder %v2677_v47, %v263_v55  ;;  %vm405_vm15 = vmor %vm301_vm12, %vm392_vm10  ;;  %vm395_vm10 = vcmp.eq.s32.totalorder %v2677_v47, %v366_v46  ;;  %v888_v46 = vand.u32 4294901760, %v887_v42  ;;  %v526_v42 = vld [vmem:[%s2781_s19 + $0x28] sm:$0xff] }
  0xad   : > { %vm404_vm8 = vmor %vm300_vm6, %vm391_vm5 }
  0xae   : > { %vm508_vm9 = vmor %vm404_vm8, %vm495_vm7  ;;  %v360_v56 = vpop.permute.xlu1 %359  ;;  %v2189_v55 = vpack.c.bf16 %v895_v54, %v888_v46 }
  0xaf   : > { %v1778_v57 = vsel %vm508_vm9, 1.0, %v2477_v53  ;;  %v278_v58 = vpop.permute.xlu0 %277  ;;  %vm393_vm11 = vcmp.eq.s32.totalorder %v2677_v47, %v360_v56 }
  0xb0   : > { %573 = vrot.lane.b32.xlu1 %v1778_v57, %s2478_s10  ;;  %vm406_vm2 = vmor %vm302_vm13, %vm393_vm11 }
  0xb3   : > { %v272_v59 = vpop.permute.xlu1 %271  ;;  %v281_v60 = vpop.permute.xlu0 %280 }
  0xb4   : > { %vm303_vm0 = vcmp.eq.s32.totalorder %v2677_v47, %v272_v59 }
  0xb5   : > { %vm407_vm6 = vmor %vm303_vm0, %vm394_vm14 }
  0xb8   : > { %v467_v61 = vpop.permute.xlu1 %466  ;;  %v461_v62 = vpop.permute.xlu0 %460 }
  0xb9   : > { %vm496_vm1 = vcmp.eq.s32.totalorder %v2677_v47, %v461_v62  ;;  %vm498_vm3 = vcmp.eq.s32.totalorder %v2677_v47, %v467_v61  ;;  %v2192_v61 = vpack.c.bf16 %v2681_v49, %v2679_v48  ;;  %v521_v62 = vld [vmem:[%s2781_s19] sm:$0xff] }
  0xba   : > { %vm509_vm5 = vmor %vm405_vm15, %vm496_vm1  ;;  %vm305_vm15 = vcmp.eq.s32.totalorder %v2677_v47, %v278_v58 }
  0xbb   : > { %v1779_v63 = vsel %vm509_vm5, 1.0, %v2477_v53  ;;  %vm511_vm7 = vmor %vm407_vm6, %vm498_vm3  ;;  %vm306_vm5 = vcmp.eq.s32.totalorder %v2677_v47, %v281_v60 }
  0xbc   : > { %v464_v2 = vpop.permute.xlu0 %463  ;;  %575 = vrot.lane.b32.xlu0 %v1779_v63, %s2478_s10  ;;  %v1781_v5 = vsel %vm511_vm7, 1.0, %v2477_v53 }
  0xbd   : > { %vm497_vm8 = vcmp.eq.s32.totalorder %v2677_v47, %v464_v2  ;;  %v275_v3 = vpop.permute.xlu1 %274 }
  0xbe   : > { %vm510_vm9 = vmor %vm406_vm2, %vm497_vm8  ;;  %vm304_vm11 = vcmp.eq.s32.totalorder %v2677_v47, %v275_v3 }
  0xbf   : > { %v1780_v4 = vsel %vm510_vm9, 1.0, %v2477_v53  ;;  %vm408_vm12 = vmor %vm304_vm11, %vm395_vm10 }
  0xc0   : > { %577 = vrot.lane.b32.xlu1 %v1780_v4, %s2478_s10  ;;  %579 = vrot.lane.b32.xlu0 %v1781_v5, %s2478_s10  ;;  %v476_v10 = vpop.permute.xlu0 %475  ;;  %v2195_v5 = vpack.c.bf16 %v2687_v52, %v2685_v51 }
  0xc1   : > { %vm501_vm6 = vcmp.eq.s32.totalorder %v2677_v47, %v476_v10 }
  0xc2   : > { %v470_v6 = vpop.permute.xlu1 %469 }
  0xc3   : > { %vm499_vm13 = vcmp.eq.s32.totalorder %v2677_v47, %v470_v6 }
  0xc4   : > { %vm512_vm14 = vmor %vm408_vm12, %vm499_vm13  ;;  %v479_v15 = vpop.permute.xlu0 %478 }
  0xc5   : > { %v1782_v7 = vsel %vm512_vm14, 1.0, %v2477_v53  ;;  %vm502_vm10 = vcmp.eq.s32.totalorder %v2677_v47, %v479_v15 }
  0xc6   : > { %581 = vrot.lane.b32.xlu1 %v1782_v7, %s2478_s10 }
  0xc7   : > { %v369_v8 = vpop.permute.xlu1 %368 }
  0xc8   : > { %vm396_vm0 = vcmp.eq.s32.totalorder %v2677_v47, %v369_v8  ;;  %v522_v8 = vld [vmem:[%s2781_s19 + $0x8] sm:$0xff] }
  0xc9   : > { %vm409_vm1 = vmor %vm305_vm15, %vm396_vm0  ;;  %v378_v19 = vpop.permute.xlu0 %377 }
  0xca   : > { %vm399_vm0 = vcmp.eq.s32.totalorder %v2677_v47, %v378_v19 }
  0xcc   : > { %v473_v9 = vpop.permute.xlu1 %472 }
  0xcd   : > { %vm500_vm2 = vcmp.eq.s32.totalorder %v2677_v47, %v473_v9  ;;  %v381_v32 = vpop.permute.xlu0 %380 }
  0xce   : > { %vm513_vm3 = vmor %vm409_vm1, %vm500_vm2 }
  0xcf   : > { %v1783_v11 = vsel %vm513_vm3, 1.0, %v2477_v53 }
  0xd0   : > { %583 = vrot.lane.b32.xlu0 %v1783_v11, %s2478_s10 }
  0xd1   : > { %v372_v12 = vpop.permute.xlu1 %371 }
  0xd2   : > { %vm397_vm7 = vcmp.eq.s32.totalorder %v2677_v47, %v372_v12  ;;  %v293_v34 = vpop.permute.xlu0 %292  ;;  %v523_v12 = vld [vmem:[%s2781_s19 + $0x10] sm:$0xff] }
  0xd3   : > { %vm410_vm8 = vmor %vm306_vm5, %vm397_vm7 }
  0xd4   : > { %vm514_vm9 = vmor %vm410_vm8, %vm501_vm6  ;;  %vm400_vm6 = vcmp.eq.s32.totalorder %v2677_v47, %v381_v32 }
  0xd5   : > { %v1784_v13 = vsel %vm514_vm9, 1.0, %v2477_v53 }
  0xd6   : > { %v284_v14 = vpop.permute.xlu1 %283  ;;  %585 = vrot.lane.b32.xlu1 %v1784_v13, %s2478_s10  ;;  %v296_v36 = vpop.permute.xlu0 %295 }
  0xd7   : > { %vm307_vm11 = vcmp.eq.s32.totalorder %v2677_v47, %v284_v14  ;;  %v524_v14 = vld [vmem:[%s2781_s19 + $0x18] sm:$0xff] }
  0xdb   : > { %v375_v16 = vpop.permute.xlu1 %374  ;;  %v491_v0 = vpop.permute.xlu0 %490 }
  0xdc   : > { %vm398_vm12 = vcmp.eq.s32.totalorder %v2677_v47, %v375_v16 }
  0xdd   : > { %vm411_vm13 = vmor %vm307_vm11, %vm398_vm12  ;;  %vm310_vm11 = vcmp.eq.s32.totalorder %v2677_v47, %v293_v34 }
  0xde   : > { %vm515_vm14 = vmor %vm411_vm13, %vm502_vm10 }
  0xdf   : > { %v1785_v17 = vsel %vm515_vm14, 1.0, %v2477_v53  ;;  %v494_v58 = vpop.permute.xlu0 %493 }
  0xe0   : > { %v287_v18 = vpop.permute.xlu1 %286  ;;  %587 = vrot.lane.b32.xlu0 %v1785_v17, %s2478_s10 }
  0xe1   : > { %vm308_vm15 = vcmp.eq.s32.totalorder %v2677_v47, %v287_v18 }
  0xe2   : > { %vm412_vm1 = vmor %vm308_vm15, %vm399_vm0  ;;  %vm506_vm15 = vcmp.eq.s32.totalorder %v2677_v47, %v491_v0  ;;  %vm311_vm0 = vcmp.eq.s32.totalorder %v2677_v47, %v296_v36 }
  0xe5   : > { %v482_v28 = vpop.permute.xlu1 %481 }
  0xe6   : > { %vm503_vm2 = vcmp.eq.s32.totalorder %v2677_v47, %v482_v28 }
  0xe7   : > { %vm516_vm3 = vmor %vm412_vm1, %vm503_vm2 }
  0xe8   : > { %v1786_v30 = vsel %vm516_vm3, 1.0, %v2477_v53 }
  0xe9   : > { %589 = vrot.lane.b32.xlu1 %v1786_v30, %s2478_s10 }
  0xea   : > { %v290_v31 = vpop.permute.xlu1 %289 }
  0xeb   : > { %vm309_vm5 = vcmp.eq.s32.totalorder %v2677_v47, %v290_v31 }
  0xec   : > { %vm413_vm7 = vmor %vm309_vm5, %vm400_vm6 }
  0xef   : > { %v485_v33 = vpop.permute.xlu1 %484 }
  0xf0   : > { %vm504_vm8 = vcmp.eq.s32.totalorder %v2677_v47, %v485_v33 }
  0xf1   : > { %vm517_vm9 = vmor %vm413_vm7, %vm504_vm8  ;;  %vm507_vm7 = vcmp.eq.s32.totalorder %v2677_v47, %v494_v58 }
  0xf2   : > { %v1787_v35 = vsel %vm517_vm9, 1.0, %v2477_v53 }
  0xf3   : > { %591 = vrot.lane.b32.xlu0 %v1787_v35, %s2478_s10 }
  0xf4   : > { %v384_v24 = vpop.permute.xlu1 %383 }
  0xf5   : > { %vm401_vm10 = vcmp.eq.s32.totalorder %v2677_v47, %v384_v24 }
  0xf6   : > { %vm414_vm12 = vmor %vm310_vm11, %vm401_vm10  ;;  %vm612_vm10 = vcmask 31744   ;;  %vm630_vm11 = vcmask 261120  }
  0xf9   : > { %v488_v37 = vpop.permute.xlu1 %487 }
  0xfa   : > { %vm505_vm13 = vcmp.eq.s32.totalorder %v2677_v47, %v488_v37 }
  0xfb   : > { %vm518_vm14 = vmor %vm414_vm12, %vm505_vm13 }
  0xfc   : > { %v1788_v1 = vsel %vm518_vm14, 1.0, %v2477_v53 }
  0xfd   : > { %593 = vrot.lane.b32.xlu1 %v1788_v1, %s2478_s10 }
  0xfe   : > { %v387_v45 = vpop.permute.xlu1 %386 }
  0xff   : > { %vm402_vm1 = vcmp.eq.s32.totalorder %v2677_v47, %v387_v45 }
 0x100   : > { %vm415_vm2 = vmor %vm311_vm0, %vm402_vm1 }
 0x101   : > { %vm519_vm3 = vmor %vm415_vm2, %vm506_vm15 }
 0x102   : > { %v1789_v56 = vsel %vm519_vm3, 1.0, %v2477_v53 }
 0x103   : > { %v299_v57 = vpop.permute.xlu1 %298  ;;  %595 = vrot.lane.b32.xlu0 %v1789_v56, %s2478_s10 }
 0x104   : > { %vm312_vm5 = vcmp.eq.s32.totalorder %v2677_v47, %v299_v57  ;;  %v527_v57 = vld [vmem:[%s2781_s19 + $0x30] sm:$0xff] }
 0x108   : > { %v390_v59 = vpop.permute.xlu1 %389 }
 0x109   : > { %vm403_vm6 = vcmp.eq.s32.totalorder %v2677_v47, %v390_v59 }
 0x10a   : > { %vm416_vm8 = vmor %vm312_vm5, %vm403_vm6 }
 0x10b   : > { %vm520_vm9 = vmor %vm416_vm8, %vm507_vm7 }
 0x10c   : > { %v1790_v60 = vsel %vm520_vm9, 1.0, %v2477_v53 }
 0x10d   : > { %597 = vrot.lane.b32.xlu1 %v1790_v60, %s2478_s10 }
 0x122   : > { %v574_v47 = vpop.permute.xlu1 %573 }
 0x123   : > { %v613_v63 = vsel %vm612_vm10, %v521_v62, %v574_v47 }
 0x124   : > { %v632_v2 = vsel %vm630_vm11, %v613_v63, 0 }
 0x125   : > { %v2786_v3 = vand.u32 4294901760, %v632_v2 }
 0x127   : > { %v2789_v4 = vsub.f32 %v632_v2, %v2786_v3 }
 0x129   : > { %v741_v6 = vand.u32 4294901760, %v2789_v4 }
 0x12b   : > { %2047 = vmatmul.mubr.f32.vlgmr.msra.gmra.mrb[0].mxu0 %v741_v6  ;;  %v742_v7 = vsub.f32 %v2789_v4, %v741_v6 }
 0x12c   : > { %2049 = vmatprep.mubr.msk.f32.mxu0 %vm2476_vm4, %v2477_v53  ;;  %2205 = vmatpush3.bf16.msra.mxu0 %v2741_v25 }
 0x12d   : > { %v743_v9 = vand.u32 4294901760, %v742_v7  ;;  %2206 = vmatprep.subr.bf16.mxu0 %v2475_v41 }
 0x12e   : > { %v576_v10 = vpop.permute.xlu0 %575 }
 0x12f   : > { %1906 = vmatmul.mubr.f32.vlgmr.msra.gmra.mrb[0].mxu1 %v743_v9  ;;  %v614_v11 = vsel %vm612_vm10, %v522_v8, %v576_v10  ;;  %v528_v9 = vld [vmem:[%s2781_s19 + $0x38] sm:$0xff] }
 0x130   : > { %1908 = vmatprep.mubr.msk.f32.mxu1 %vm2476_vm4, %v2477_v53  ;;  %2187 = vmatpush3.bf16.msra.mxu1 %v2746_v29  ;;  %v635_v13 = vsel %vm630_vm11, %v614_v11, 0 }
 0x131   : > { %2188 = vmatprep.subr.bf16.mxu1 %v2475_v41  ;;  %2208 = vmatpush3.bf16.msra.mxu0 %v2207_v44  ;;  %v2808_v15 = vand.u32 4294901760, %v635_v13 }
 0x132   : > { %v578_v16 = vpop.permute.xlu1 %577  ;;  %2209 = vmatprep.subr.bf16.mxu0 %v2475_v41  ;;  %v580_v18 = vpop.permute.xlu0 %579 }
 0x133   : > { %v615_v17 = vsel %vm612_vm10, %v523_v12, %v578_v16  ;;  %v2813_v19 = vsub.f32 %v635_v13, %v2808_v15  ;;  %v616_v21 = vsel %vm612_vm10, %v524_v14, %v580_v18  ;;  %v529_v18 = vld [vmem:[%s2781_s19 + $0x40] sm:$0xff] }
 0x134   : > { %v638_v20 = vsel %vm630_vm11, %v615_v17, 0  ;;  %2190 = vmatpush3.bf16.msra.mxu1 %v2189_v55  ;;  %v641_v23 = vsel %vm630_vm11, %v616_v21, 0 }
 0x135   : > { %v2817_v22 = vand.u32 4294901760, %v638_v20  ;;  %2191 = vmatprep.subr.bf16.mxu1 %v2475_v41  ;;  %v2821_v25 = vand.u32 4294901760, %v641_v23  ;;  %v751_v26 = vand.u32 4294901760, %v2813_v19 }
 0x137   : > { %v2826_v28 = vsub.f32 %v638_v20, %v2817_v22  ;;  %v2829_v29 = vsub.f32 %v641_v23, %v2821_v25  ;;  %2050 = vmatmul.mubr.f32.gmra.mrb[2].mxu0 %v751_v26  ;;  %v752_v31 = vsub.f32 %v2813_v19, %v751_v26 }
 0x138   : > { %v582_v30 = vpop.permute.xlu1 %581  ;;  %2052 = vmatprep.mubr.msk.f32.mxu0 %vm2476_vm4, %v2477_v53 }
 0x139   : > { %v617_v32 = vsel %vm612_vm10, %v525_v27, %v582_v30  ;;  %v761_v33 = vand.u32 4294901760, %v2826_v28  ;;  %v753_v35 = vand.u32 4294901760, %v752_v31  ;;  %v771_v24 = vand.u32 4294901760, %v2829_v29 }
 0x13a   : > { %v644_v34 = vsel %vm630_vm11, %v617_v32, 0 }
 0x13b   : > { %v2838_v36 = vand.u32 4294901760, %v644_v34  ;;  %v762_v37 = vsub.f32 %v2826_v28, %v761_v33  ;;  %1909 = vmatmul.mubr.f32.gmra.mrb[2].mxu1 %v753_v35  ;;  %2053 = vmatmul.mubr.f32.gmra.mrb[4].mxu0 %v761_v33  ;;  %v772_v0 = vsub.f32 %v2829_v29, %v771_v24 }
 0x13c   : > { %1911 = vmatprep.mubr.msk.f32.mxu1 %vm2476_vm4, %v2477_v53  ;;  %2055 = vmatprep.mubr.msk.f32.mxu0 %vm2476_vm4, %v2477_v53 }
 0x13d   : > { %v2842_v38 = vsub.f32 %v644_v34, %v2838_v36  ;;  %v763_v39 = vand.u32 4294901760, %v762_v37  ;;  %v773_v44 = vand.u32 4294901760, %v772_v0  ;;  %v530_v34 = vld [vmem:[%s2781_s19 + $0x48] sm:$0xff] }
 0x13f   : > { %v781_v1 = vand.u32 4294901760, %v2842_v38  ;;  %1912 = vmatmul.mubr.f32.gmra.mrb[4].mxu1 %v763_v39  ;;  %2056 = vmatmul.mubr.f32.gmra.mrb[6].mxu0 %v771_v24 }
 0x140   : > { %1914 = vmatprep.mubr.msk.f32.mxu1 %vm2476_vm4, %v2477_v53  ;;  %2058 = vmatprep.mubr.msk.f32.mxu0 %vm2476_vm4, %v2477_v53 }
 0x141   : > { %v782_v45 = vsub.f32 %v2842_v38, %v781_v1 }
 0x142   : > { %v584_v43 = vpop.permute.xlu0 %583 }
 0x143   : > { %v618_v46 = vsel %vm612_vm10, %v526_v42, %v584_v43  ;;  %1915 = vmatmul.mubr.f32.gmra.mrb[6].mxu1 %v773_v44  ;;  %2059 = vmatmul.mubr.f32.gmra.mrb[8].mxu0 %v781_v1  ;;  %v783_v56 = vand.u32 4294901760, %v782_v45  ;;  %v531_v44 = vld [vmem:[%s2781_s19 + $0x50] sm:$0xff] }
 0x144   : > { %v647_v54 = vsel %vm630_vm11, %v618_v46, 0  ;;  %1917 = vmatprep.mubr.msk.f32.mxu1 %vm2476_vm4, %v2477_v53  ;;  %2061 = vmatprep.mubr.msk.f32.mxu0 %vm2476_vm4, %v2477_v53 }
 0x145   : > { %v2858_v55 = vand.u32 4294901760, %v647_v54 }
 0x147   : > { %v2866_v58 = vsub.f32 %v647_v54, %v2858_v55  ;;  %1918 = vmatmul.mubr.f32.gmra.mrb[8].mxu1 %v783_v56 }
 0x148   : > { %v586_v59 = vpop.permute.xlu1 %585  ;;  %1920 = vmatprep.mubr.msk.f32.mxu1 %vm2476_vm4, %v2477_v53 }
 0x149   : > { %v619_v60 = vsel %vm612_vm10, %v527_v57, %v586_v59  ;;  %v791_v62 = vand.u32 4294901760, %v2866_v58 }
 0x14a   : > { %v650_v47 = vsel %vm630_vm11, %v619_v60, 0  ;;  %v532_v60 = vld [vmem:[%s2781_s19 + $0x58] sm:$0xff] }
 0x14b   : > { %v2873_v63 = vand.u32 4294901760, %v650_v47  ;;  %2062 = vmatmul.mubr.f32.gmra.mrb[10].mxu0 %v791_v62  ;;  %v792_v2 = vsub.f32 %v2866_v58, %v791_v62 }
 0x14c   : > { %2064 = vmatprep.mubr.msk.f32.mxu0 %vm2476_vm4, %v2477_v53 }
 0x14d   : > { %v2879_v6 = vsub.f32 %v650_v47, %v2873_v63  ;;  %v793_v7 = vand.u32 4294901760, %v792_v2 }
 0x14f   : > { %1921 = vmatmul.mubr.f32.gmra.mrb[10].mxu1 %v793_v7  ;;  %v801_v8 = vand.u32 4294901760, %v2879_v6 }
 0x150   : > { %1923 = vmatprep.mubr.msk.f32.mxu1 %vm2476_vm4, %v2477_v53 }
 0x151   : > { %2065 = vmatmul.mubr.f32.gmra.mrb[12].mxu0 %v801_v8  ;;  %v802_v10 = vsub.f32 %v2879_v6, %v801_v8 }
 0x152   : > { %v588_v11 = vpop.permute.xlu0 %587  ;;  %2067 = vmatprep.mubr.msk.f32.mxu0 %vm2476_vm4, %v2477_v53 }
 0x153   : > { %v620_v12 = vsel %vm612_vm10, %v528_v9, %v588_v11  ;;  %v803_v13 = vand.u32 4294901760, %v802_v10 }
 0x154   : > { %v653_v14 = vsel %vm630_vm11, %v620_v12, 0 }
 0x155   : > { %v2890_v16 = vand.u32 4294901760, %v653_v14  ;;  %1924 = vmatmul.mubr.f32.gmra.mrb[12].mxu1 %v803_v13 }
 0x156   : > { %1926 = vmatprep.mubr.msk.f32.mxu1 %vm2476_vm4, %v2477_v53 }
 0x157   : > { %v2895_v17 = vsub.f32 %v653_v14, %v2890_v16  ;;  %v533_v14 = vld [vmem:[%s2781_s19 + $0x60] sm:$0xff] }
 0x159   : > { %v811_v20 = vand.u32 4294901760, %v2895_v17 }
 0x15b   : > { %v590_v21 = vpop.permute.xlu1 %589  ;;  %2068 = vmatmul.mubr.f32.gmra.mrb[14].mxu0 %v811_v20  ;;  %v812_v23 = vsub.f32 %v2895_v17, %v811_v20 }
 0x15c   : > { %v621_v26 = vsel %vm612_vm10, %v529_v18, %v590_v21  ;;  %2070 = vmatprep.mubr.msk.f32.mxu0 %vm2476_vm4, %v2477_v53 }
 0x15d   : > { %v656_v27 = vsel %vm630_vm11, %v621_v26, 0  ;;  %v813_v30 = vand.u32 4294901760, %v812_v23 }
 0x15e   : > { %v2904_v31 = vand.u32 4294901760, %v656_v27 }
 0x15f   : > { %1927 = vmatmul.mubr.f32.gmra.mrb[14].mxu1 %v813_v30 }
 0x160   : > { %v2907_v32 = vsub.f32 %v656_v27, %v2904_v31  ;;  %1929 = vmatprep.mubr.msk.f32.mxu1 %vm2476_vm4, %v2477_v53 }
 0x162   : > { %v821_v33 = vand.u32 4294901760, %v2907_v32 }
 0x164   : > { %2071 = vmatmul.mubr.f32.gmra.mrb[16].mxu0 %v821_v33  ;;  %v822_v35 = vsub.f32 %v2907_v32, %v821_v33 }
 0x165   : > { %v592_v24 = vpop.permute.xlu0 %591  ;;  %2073 = vmatprep.mubr.msk.f32.mxu0 %vm2476_vm4, %v2477_v53 }
 0x166   : > { %v622_v37 = vsel %vm612_vm10, %v530_v34, %v592_v24  ;;  %v823_v39 = vand.u32 4294901760, %v822_v35 }
 0x167   : > { %v659_v0 = vsel %vm630_vm11, %v622_v37, 0 }
 0x168   : > { %v2918_v1 = vand.u32 4294901760, %v659_v0  ;;  %1930 = vmatmul.mubr.f32.gmra.mrb[16].mxu1 %v823_v39 }
 0x169   : > { %1932 = vmatprep.mubr.msk.f32.mxu1 %vm2476_vm4, %v2477_v53 }
 0x16a   : > { %v2923_v42 = vsub.f32 %v659_v0, %v2918_v1 }
 0x16c   : > { %v831_v43 = vand.u32 4294901760, %v2923_v42 }
 0x16e   : > { %2074 = vmatmul.mubr.f32.gmra.mrb[18].mxu0 %v831_v43  ;;  %v832_v45 = vsub.f32 %v2923_v42, %v831_v43 }
 0x16f   : > { %v594_v46 = vpop.permute.xlu1 %593  ;;  %2076 = vmatprep.mubr.msk.f32.mxu0 %vm2476_vm4, %v2477_v53 }
 0x170   : > { %v623_v54 = vsel %vm612_vm10, %v531_v44, %v594_v46  ;;  %v833_v56 = vand.u32 4294901760, %v832_v45 }
 0x171   : > { %v662_v57 = vsel %vm630_vm11, %v623_v54, 0 }
 0x172   : > { %v2932_v59 = vand.u32 4294901760, %v662_v57  ;;  %1933 = vmatmul.mubr.f32.gmra.mrb[18].mxu1 %v833_v56 }
 0x173   : > { %1935 = vmatprep.mubr.msk.f32.mxu1 %vm2476_vm4, %v2477_v53 }
 0x174   : > { %v2938_v62 = vsub.f32 %v662_v57, %v2932_v59 }
 0x175   : > { %v596_v47 = vpop.permute.xlu0 %595 }
 0x176   : > { %v624_v2 = vsel %vm612_vm10, %v532_v60, %v596_v47  ;;  %v841_v7 = vand.u32 4294901760, %v2938_v62 }
 0x177   : > { %v665_v8 = vsel %vm630_vm11, %v624_v2, 0 }
 0x178   : > { %v2943_v9 = vand.u32 4294901760, %v665_v8  ;;  %2077 = vmatmul.mubr.f32.gmra.mrb[20].mxu0 %v841_v7  ;;  %v842_v10 = vsub.f32 %v2938_v62, %v841_v7 }
 0x179   : > { %2079 = vmatprep.mubr.msk.f32.mxu0 %vm2476_vm4, %v2477_v53 }
 0x17a   : > { %v2949_v11 = vsub.f32 %v665_v8, %v2943_v9  ;;  %v843_v12 = vand.u32 4294901760, %v842_v10 }
 0x17c   : > { %1936 = vmatmul.mubr.f32.gmra.mrb[20].mxu1 %v843_v12  ;;  %v851_v13 = vand.u32 4294901760, %v2949_v11 }
 0x17d   : > { %1938 = vmatprep.mubr.msk.f32.mxu1 %vm2476_vm4, %v2477_v53 }
 0x17e   : > { %2080 = vmatmul.mubr.f32.gmra.mrb[22].mxu0 %v851_v13  ;;  %v852_v18 = vsub.f32 %v2949_v11, %v851_v13 }
 0x17f   : > { %v598_v20 = vpop.permute.xlu1 %597  ;;  %2082 = vmatprep.mubr.msk.f32.mxu0 %vm2476_vm4, %v2477_v53 }
 0x180   : > { %v625_v21 = vsel %vm612_vm10, %v533_v14, %v598_v20  ;;  %v853_v23 = vand.u32 4294901760, %v852_v18 }
 0x181   : > { %v668_v26 = vsel %vm630_vm11, %v625_v21, 0 }
 0x182   : > { %v2960_v27 = vand.u32 4294901760, %v668_v26  ;;  %1939 = vmatmul.mubr.f32.gmra.mrb[22].mxu1 %v853_v23 }
 0x183   : > { %1941 = vmatprep.mubr.msk.f32.mxu1 %vm2476_vm4, %v2477_v53 }
 0x184   : > { %v2965_v30 = vsub.f32 %v668_v26, %v2960_v27 }
 0x186   : > { %v861_v33 = vand.u32 4294901760, %v2965_v30 }
 0x188   : > { %2083 = vmatmul.mubr.f32.gmra.mrb[24].mxu0 %v861_v33  ;;  %v862_v34 = vsub.f32 %v2965_v30, %v861_v33 }
 0x189   : > { %2093 = vmatprep.mubr.msk.f32.mxu0 %vm2476_vm4, %v2477_v53 }
 0x18a   : > { %v863_v35 = vand.u32 4294901760, %v862_v34 }
 0x18c   : > { %1942 = vmatmul.mubr.f32.gmra.mrb[24].mxu1 %v863_v35  ;;  %2094 = vmatmul.mubr.f32.vlgmr.msra.gmra.mrb[0].mxu0 %v2786_v3 }
 0x18d   : > { %1952 = vmatprep.mubr.msk.f32.mxu1 %vm2476_vm4, %v2477_v53  ;;  %2096 = vmatprep.mubr.msk.f32.mxu0 %vm2476_vm4, %v2477_v53 }
 0x18e   : > { %2211 = vmatpush3.bf16.msra.mxu0 %v2663_v40 }
 0x18f   : > { %2212 = vmatprep.subr.bf16.mxu0 %v2475_v41 }
 0x190   : > { %1953 = vmatmul.mubr.f32.vlgmr.msra.gmra.mrb[0].mxu1 %v2786_v3  ;;  %2097 = vmatmul.mubr.f32.gmra.mrb[2].mxu0 %v2808_v15 }
 0x191   : > { %2193 = vmatpush3.bf16.msra.mxu1 %v2192_v61  ;;  %1955 = vmatprep.mubr.msk.f32.mxu1 %vm2476_vm4, %v2477_v53 }
 0x192   : > { %2099 = vmatprep.mubr.msk.f32.mxu0 %vm2476_vm4, %v2477_v53  ;;  %2194 = vmatprep.subr.bf16.mxu1 %v2475_v41 }
 0x193   : > { %2214 = vmatpush3.bf16.msra.mxu0 %v2683_v50 }
 0x194   : > { %1956 = vmatmul.mubr.f32.gmra.mrb[2].mxu1 %v2808_v15  ;;  %2100 = vmatmul.mubr.f32.gmra.mrb[4].mxu0 %v2817_v22 }
 0x195   : > { %1958 = vmatprep.mubr.msk.f32.mxu1 %vm2476_vm4, %v2477_v53  ;;  %2102 = vmatprep.mubr.msk.f32.mxu0 %vm2476_vm4, %v2477_v53 }
 0x196   : > { %2196 = vmatpush3.bf16.msra.mxu1 %v2195_v5 }
 0x198   : > { %1959 = vmatmul.mubr.f32.gmra.mrb[4].mxu1 %v2817_v22  ;;  %2103 = vmatmul.mubr.f32.gmra.mrb[6].mxu0 %v2821_v25 }
 0x199   : > { %1961 = vmatprep.mubr.msk.f32.mxu1 %vm2476_vm4, %v2477_v53  ;;  %2105 = vmatprep.mubr.msk.f32.mxu0 %vm2476_vm4, %v2477_v53 }
 0x19c   : > { %1962 = vmatmul.mubr.f32.gmra.mrb[6].mxu1 %v2821_v25  ;;  %2106 = vmatmul.mubr.f32.gmra.mrb[8].mxu0 %v2838_v36 }
 0x19d   : > { %1964 = vmatprep.mubr.msk.f32.mxu1 %vm2476_vm4, %v2477_v53  ;;  %2108 = vmatprep.mubr.msk.f32.mxu0 %vm2476_vm4, %v2477_v53 }
 0x1a0   : > { %1965 = vmatmul.mubr.f32.gmra.mrb[8].mxu1 %v2838_v36  ;;  %2109 = vmatmul.mubr.f32.gmra.mrb[10].mxu0 %v2858_v55 }
 0x1a1   : > { %1967 = vmatprep.mubr.msk.f32.mxu1 %vm2476_vm4, %v2477_v53  ;;  %2111 = vmatprep.mubr.msk.f32.mxu0 %vm2476_vm4, %v2477_v53 }
 0x1a4   : > { %1968 = vmatmul.mubr.f32.gmra.mrb[10].mxu1 %v2858_v55  ;;  %2112 = vmatmul.mubr.f32.gmra.mrb[12].mxu0 %v2873_v63 }
 0x1a5   : > { %1970 = vmatprep.mubr.msk.f32.mxu1 %vm2476_vm4, %v2477_v53  ;;  %2114 = vmatprep.mubr.msk.f32.mxu0 %vm2476_vm4, %v2477_v53 }
 0x1a8   : > { %1971 = vmatmul.mubr.f32.gmra.mrb[12].mxu1 %v2873_v63  ;;  %2115 = vmatmul.mubr.f32.gmra.mrb[14].mxu0 %v2890_v16 }
 0x1a9   : > { %1973 = vmatprep.mubr.msk.f32.mxu1 %vm2476_vm4, %v2477_v53  ;;  %2117 = vmatprep.mubr.msk.f32.mxu0 %vm2476_vm4, %v2477_v53 }
 0x1ac   : > { %1974 = vmatmul.mubr.f32.gmra.mrb[14].mxu1 %v2890_v16  ;;  %2118 = vmatmul.mubr.f32.gmra.mrb[16].mxu0 %v2904_v31 }
 0x1ad   : > { %1976 = vmatprep.mubr.msk.f32.mxu1 %vm2476_vm4, %v2477_v53  ;;  %2120 = vmatprep.mubr.msk.f32.mxu0 %vm2476_vm4, %v2477_v53 }
 0x1b0   : > { %1977 = vmatmul.mubr.f32.gmra.mrb[16].mxu1 %v2904_v31  ;;  %2121 = vmatmul.mubr.f32.gmra.mrb[18].mxu0 %v2918_v1 }
 0x1b1   : > { %1979 = vmatprep.mubr.msk.f32.mxu1 %vm2476_vm4, %v2477_v53  ;;  %2123 = vmatprep.mubr.msk.f32.mxu0 %vm2476_vm4, %v2477_v53 }
 0x1b4   : > { %1980 = vmatmul.mubr.f32.gmra.mrb[18].mxu1 %v2918_v1  ;;  %2124 = vmatmul.mubr.f32.gmra.mrb[20].mxu0 %v2932_v59 }
 0x1b5   : > { %1982 = vmatprep.mubr.msk.f32.mxu1 %vm2476_vm4, %v2477_v53  ;;  %2126 = vmatprep.mubr.msk.f32.mxu0 %vm2476_vm4, %v2477_v53 }
 0x1b8   : > { %1983 = vmatmul.mubr.f32.gmra.mrb[20].mxu1 %v2932_v59  ;;  %2127 = vmatmul.mubr.f32.gmra.mrb[22].mxu0 %v2943_v9 }
 0x1b9   : > { %1985 = vmatprep.mubr.msk.f32.mxu1 %vm2476_vm4, %v2477_v53  ;;  %2129 = vmatprep.mubr.msk.f32.mxu0 %vm2476_vm4, %v2477_v53 }
 0x1bc   : > { %1986 = vmatmul.mubr.f32.gmra.mrb[22].mxu1 %v2943_v9  ;;  %2130 = vmatmul.mubr.f32.gmra.mrb[24].mxu0 %v2960_v27 }
 0x1bd   : > { %1988 = vmatprep.mubr.msk.f32.mxu1 %vm2476_vm4, %v2477_v53  ;;  %2140 = vmatprep.mubr.msk.f32.mxu0 %vm2476_vm4, %v2477_v53 }
 0x1c0   : > { %1989 = vmatmul.mubr.f32.gmra.mrb[24].mxu1 %v2960_v27  ;;  %2141 = vmatmul.mubr.f32.vlgmr.msra.gmra.mrb[0].mxu0 %v2786_v3 }
 0x1c1   : > { %1999 = vmatprep.mubr.msk.f32.mxu1 %vm2476_vm4, %v2477_v53  ;;  %2143 = vmatprep.mubr.msk.f32.mxu0 %vm2476_vm4, %v2477_v53 }
 0x1c4   : > { %2000 = vmatmul.mubr.f32.vlgmr.msra.gmra.mrb[0].mxu1 %v2789_v4  ;;  %2144 = vmatmul.mubr.f32.gmra.mrb[2].mxu0 %v2808_v15 }
 0x1c5   : > { %2002 = vmatprep.mubr.msk.f32.mxu1 %vm2476_vm4, %v2477_v53  ;;  %2146 = vmatprep.mubr.msk.f32.mxu0 %vm2476_vm4, %v2477_v53 }
 0x1c8   : > { %2003 = vmatmul.mubr.f32.gmra.mrb[2].mxu1 %v2813_v19  ;;  %2147 = vmatmul.mubr.f32.gmra.mrb[4].mxu0 %v2817_v22 }
 0x1c9   : > { %2005 = vmatprep.mubr.msk.f32.mxu1 %vm2476_vm4, %v2477_v53  ;;  %2149 = vmatprep.mubr.msk.f32.mxu0 %vm2476_vm4, %v2477_v53 }
 0x1cc   : > { %2006 = vmatmul.mubr.f32.gmra.mrb[4].mxu1 %v2826_v28  ;;  %2150 = vmatmul.mubr.f32.gmra.mrb[6].mxu0 %v2821_v25 }
 0x1cd   : > { %2008 = vmatprep.mubr.msk.f32.mxu1 %vm2476_vm4, %v2477_v53  ;;  %2152 = vmatprep.mubr.msk.f32.mxu0 %vm2476_vm4, %v2477_v53 }
 0x1d0   : > { %2009 = vmatmul.mubr.f32.gmra.mrb[6].mxu1 %v2829_v29  ;;  %2153 = vmatmul.mubr.f32.gmra.mrb[8].mxu0 %v2838_v36 }
 0x1d1   : > { %2011 = vmatprep.mubr.msk.f32.mxu1 %vm2476_vm4, %v2477_v53  ;;  %2155 = vmatprep.mubr.msk.f32.mxu0 %vm2476_vm4, %v2477_v53 }
 0x1d4   : > { %2012 = vmatmul.mubr.f32.gmra.mrb[8].mxu1 %v2842_v38  ;;  %2156 = vmatmul.mubr.f32.gmra.mrb[10].mxu0 %v2858_v55 }
 0x1d5   : > { %2014 = vmatprep.mubr.msk.f32.mxu1 %vm2476_vm4, %v2477_v53  ;;  %2158 = vmatprep.mubr.msk.f32.mxu0 %vm2476_vm4, %v2477_v53 }
 0x1d8   : > { %2015 = vmatmul.mubr.f32.gmra.mrb[10].mxu1 %v2866_v58  ;;  %2159 = vmatmul.mubr.f32.gmra.mrb[12].mxu0 %v2873_v63 }
 0x1d9   : > { %2017 = vmatprep.mubr.msk.f32.mxu1 %vm2476_vm4, %v2477_v53  ;;  %2161 = vmatprep.mubr.msk.f32.mxu0 %vm2476_vm4, %v2477_v53 }
 0x1dc   : > { %2018 = vmatmul.mubr.f32.gmra.mrb[12].mxu1 %v2879_v6  ;;  %2162 = vmatmul.mubr.f32.gmra.mrb[14].mxu0 %v2890_v16 }
 0x1dd   : > { %2020 = vmatprep.mubr.msk.f32.mxu1 %vm2476_vm4, %v2477_v53  ;;  %2164 = vmatprep.mubr.msk.f32.mxu0 %vm2476_vm4, %v2477_v53 }
 0x1e0   : > { %2021 = vmatmul.mubr.f32.gmra.mrb[14].mxu1 %v2895_v17  ;;  %2165 = vmatmul.mubr.f32.gmra.mrb[16].mxu0 %v2904_v31 }
 0x1e1   : > { %2023 = vmatprep.mubr.msk.f32.mxu1 %vm2476_vm4, %v2477_v53  ;;  %2167 = vmatprep.mubr.msk.f32.mxu0 %vm2476_vm4, %v2477_v53 }
 0x1e4   : > { %2024 = vmatmul.mubr.f32.gmra.mrb[16].mxu1 %v2907_v32  ;;  %2168 = vmatmul.mubr.f32.gmra.mrb[18].mxu0 %v2918_v1 }
 0x1e5   : > { %2026 = vmatprep.mubr.msk.f32.mxu1 %vm2476_vm4, %v2477_v53  ;;  %2170 = vmatprep.mubr.msk.f32.mxu0 %vm2476_vm4, %v2477_v53 }
 0x1e8   : > { %2027 = vmatmul.mubr.f32.gmra.mrb[18].mxu1 %v2923_v42  ;;  %2171 = vmatmul.mubr.f32.gmra.mrb[20].mxu0 %v2932_v59 }
 0x1e9   : > { %2029 = vmatprep.mubr.msk.f32.mxu1 %vm2476_vm4, %v2477_v53  ;;  %2173 = vmatprep.mubr.msk.f32.mxu0 %vm2476_vm4, %v2477_v53 }
 0x1ec   : > { %2030 = vmatmul.mubr.f32.gmra.mrb[20].mxu1 %v2938_v62  ;;  %2174 = vmatmul.mubr.f32.gmra.mrb[22].mxu0 %v2943_v9 }
 0x1ed   : > { %2032 = vmatprep.mubr.msk.f32.mxu1 %vm2476_vm4, %v2477_v53  ;;  %2176 = vmatprep.mubr.msk.f32.mxu0 %vm2476_vm4, %v2477_v53 }
 0x1f0   : > { %2033 = vmatmul.mubr.f32.gmra.mrb[22].mxu1 %v2949_v11  ;;  %2177 = vmatmul.mubr.f32.gmra.mrb[24].mxu0 %v2960_v27 }
 0x1f1   : > { %2035 = vmatprep.mubr.msk.f32.mxu1 %vm2476_vm4, %v2477_v53 }
 0x1f4   : > { %2036 = vmatmul.mubr.f32.gmra.mrb[24].mxu1 %v2965_v30 }
 0x293   : > { %v1595_v40 = vpop.f32.mrb[0].mxu0 }
 0x294   : > { %v2142_v41 = vpop.f32.mrb[1].mxu0 }
 0x297   : > { %v1108_v48 = vpop.f32.mrb[0].mxu1  ;;  %v1601_v49 = vpop.f32.mrb[2].mxu0 }
 0x298   : > { %v2215_v50 = vadd.f32 %v1595_v40, %v1108_v48  ;;  %v2001_v51 = vpop.f32.mrb[1].mxu1  ;;  %v2145_v52 = vpop.f32.mrb[3].mxu0 }
 0x29a   : > { %1671 = vst [vmem:[%s3138_s25] sm:$0xff] %v2215_v50 }
 0x29b   : > { %v1115_v61 = vpop.f32.mrb[2].mxu1  ;;  %v1607_v53 = vpop.f32.mrb[4].mxu0 }
 0x29c   : > { %v2216_v3 = vadd.f32 %v1601_v49, %v1115_v61  ;;  %v2004_v4 = vpop.f32.mrb[3].mxu1  ;;  %v2148_v5 = vpop.f32.mrb[5].mxu0 }
 0x29e   : > { %1672 = vst [vmem:[%s3138_s25 + $0x8] sm:$0xff] %v2216_v3 }
 0x29f   : > { %v1122_v15 = vpop.f32.mrb[4].mxu1  ;;  %v1613_v19 = vpop.f32.mrb[6].mxu0 }
 0x2a0   : > { %v2217_v22 = vadd.f32 %v1607_v53, %v1122_v15  ;;  %v2007_v25 = vpop.f32.mrb[5].mxu1  ;;  %v2151_v28 = vpop.f32.mrb[7].mxu0 }
 0x2a2   : > { %1673 = vst [vmem:[%s3138_s25 + $0x10] sm:$0xff] %v2217_v22 }
 0x2a3   : > { %v1129_v29 = vpop.f32.mrb[6].mxu1  ;;  %v1619_v36 = vpop.f32.mrb[8].mxu0 }
 0x2a4   : > { %v2218_v38 = vadd.f32 %v1613_v19, %v1129_v29  ;;  %v2010_v55 = vpop.f32.mrb[7].mxu1  ;;  %v2154_v58 = vpop.f32.mrb[9].mxu0 }
 0x2a6   : > { %1674 = vst [vmem:[%s3138_s25 + $0x18] sm:$0xff] %v2218_v38 }
 0x2a7   : > { %v1136_v63 = vpop.f32.mrb[8].mxu1  ;;  %v1625_v6 = vpop.f32.mrb[10].mxu0 }
 0x2a8   : > { %v2219_v16 = vadd.f32 %v1619_v36, %v1136_v63  ;;  %v2013_v17 = vpop.f32.mrb[9].mxu1  ;;  %v2157_v31 = vpop.f32.mrb[11].mxu0 }
 0x2aa   : > { %1675 = vst [vmem:[%s3138_s25 + $0x20] sm:$0xff] %v2219_v16 }
 0x2ab   : > { %v1143_v32 = vpop.f32.mrb[10].mxu1  ;;  %v1631_v24 = vpop.f32.mrb[12].mxu0 }
 0x2ac   : > { %v2220_v37 = vadd.f32 %v1625_v6, %v1143_v32  ;;  %v2016_v39 = vpop.f32.mrb[11].mxu1  ;;  %v2160_v0 = vpop.f32.mrb[13].mxu0 }
 0x2ae   : > { %1676 = vst [vmem:[%s3138_s25 + $0x28] sm:$0xff] %v2220_v37 }
 0x2af   : > { %v1150_v1 = vpop.f32.mrb[12].mxu1  ;;  %v1637_v42 = vpop.f32.mrb[14].mxu0 }
 0x2b0   : > { %v2221_v43 = vadd.f32 %v1631_v24, %v1150_v1  ;;  %v2019_v44 = vpop.f32.mrb[13].mxu1  ;;  %v2163_v45 = vpop.f32.mrb[15].mxu0 }
 0x2b2   : > { %1677 = vst [vmem:[%s3138_s25 + $0x30] sm:$0xff] %v2221_v43 }
 0x2b3   : > { %v1157_v46 = vpop.f32.mrb[14].mxu1  ;;  %v1643_v54 = vpop.f32.mrb[16].mxu0 }
 0x2b4   : > { %v2222_v56 = vadd.f32 %v1637_v42, %v1157_v46  ;;  %v2022_v57 = vpop.f32.mrb[15].mxu1  ;;  %v2166_v59 = vpop.f32.mrb[17].mxu0 }
 0x2b6   : > { %1678 = vst [vmem:[%s3138_s25 + $0x38] sm:$0xff] %v2222_v56 }
 0x2b7   : > { %v1164_v60 = vpop.f32.mrb[16].mxu1  ;;  %v1649_v62 = vpop.f32.mrb[18].mxu0 }
 0x2b8   : > { %v2223_v47 = vadd.f32 %v1643_v54, %v1164_v60  ;;  %v2025_v2 = vpop.f32.mrb[17].mxu1  ;;  %v2169_v7 = vpop.f32.mrb[19].mxu0 }
 0x2ba   : > { %1679 = vst [vmem:[%s3138_s25 + $0x40] sm:$0xff] %v2223_v47 }
 0x2bb   : > { %v1171_v8 = vpop.f32.mrb[18].mxu1  ;;  %v1655_v9 = vpop.f32.mrb[20].mxu0 }
 0x2bc   : > { %v2224_v10 = vadd.f32 %v1649_v62, %v1171_v8  ;;  %v2028_v11 = vpop.f32.mrb[19].mxu1  ;;  %v2172_v12 = vpop.f32.mrb[21].mxu0 }
 0x2be   : > { %1680 = vst [vmem:[%s3138_s25 + $0x48] sm:$0xff] %v2224_v10 }
 0x2bf   : > { %v1178_v13 = vpop.f32.mrb[20].mxu1  ;;  %v1661_v14 = vpop.f32.mrb[22].mxu0 }
 0x2c0   : > { %v2225_v18 = vadd.f32 %v1655_v9, %v1178_v13  ;;  %v2031_v20 = vpop.f32.mrb[21].mxu1  ;;  %v2175_v21 = vpop.f32.mrb[23].mxu0 }
 0x2c2   : > { %1681 = vst [vmem:[%s3138_s25 + $0x50] sm:$0xff] %v2225_v18 }
 0x2c3   : > { %v1185_v23 = vpop.f32.mrb[22].mxu1  ;;  %v1667_v26 = vpop.f32.mrb[24].mxu0 }
 0x2c4   : > { %v2226_v27 = vadd.f32 %v1661_v14, %v1185_v23  ;;  %v2034_v30 = vpop.f32.mrb[23].mxu1  ;;  %v2178_v33 = vpop.f32.mrb[25].mxu0 }
 0x2c6   : > { %1682 = vst [vmem:[%s3138_s25 + $0x58] sm:$0xff] %v2226_v27 }
 0x2c7   : > { %v1192_v34 = vpop.f32.mrb[24].mxu1 }
 0x2c8   : > { %v2227_v35 = vadd.f32 %v1667_v26, %v1192_v34  ;;  %v2037_v40 = vpop.f32.mrb[25].mxu1 }
 0x2ca   : > { %1683 = vst [vmem:[%s3138_s25 + $0x60] sm:$0xff] %v2227_v35 }
 0x2cb   : > { %2421 = shalt.err (!%p2418_p3)
}
 0x2cc   : > { %s2422_s8 = scalar_lea.hbm %s3157_s30, 1664  ;;  %s2426_s11 = scalar_lea.hbm %s3208_s3, 3328 }
 0x2cd   : > { %p2423_p4 = scmp.ne.s32.totalorder %s3157_s30, %s2422_s8  ;;  %p2427_p9 = scmp.lt.u32.totalorder %s3157_s30, %s3208_s3 }
 0x2ce   : > { %p2428_p10 = scmp.lt.u32.totalorder %s2426_s11, %s2422_s8  ;;  %p2430_p12 = scmp.lt.u32.totalorder %s2422_s8, %s3157_s30 }
 0x2cf   : > { %p2424_p7 = pnand %p2423_p4, %p2540_p5 }
 0x2d0   : > { %p2429_p11 = por %p2428_p10, %p2427_p9 }
 0x2d1   : > { %p2425_p8 = pneg %p2424_p7 }
 0x2d2   : > { %p2431_p13 = por %p2430_p12, %p2429_p11 }
 0x2d4   : > { %p2432_p0 = pnand %p2431_p13, %p2425_p8 }
 0x2d6   : > { %2435 = shalt.err (!%p2432_p0)
}
 0x2d7   : > { %s2480_s20 = smov 128   ;;  %s2481_s24 = smov 8  }
 0x2d8   : > { %2333 = dma.vmem_to_hbm [thread:$0]  (%p2540_p5), %s3159_s27, 1664, %s3157_s30, %s3164_s16, %s2480_s20, %s2480_s20, %s2481_s24  }
 0x2d9 PF: > { %p2339_p1 = scmp.ge.s32.totalorder %s2470_s15, 2  ;;  %s1713_s25 = sand.u32 1, %s2458_s12  }
 0x2da   : > { %s1714_s26 = scalar_lea.sflag [#allocation3], %s1713_s25 }
 0x2db   : > { %p2336_p2 = pnand %p2339_p1, %p2544_p6 }
 0x2dd   : > { %2453 = dma.done.wait (!%p2336_p2), %s1714_s26, 1664  }
 0x2de   : > { %2455 = vsyncadd (!%p2336_p2), %s1714_s26, 4294965632  ;;  %p13_p3 = scmp.ge.s32.totalorder %s2527_s18, 4   ;;  %s3211_s12 = smov %s2462_s13 }
 0x2df   : > { %s3212_s13 = smov %s2466_s14  ;;  %s3213_s14 = smov %s2538_s21 }
 0x2e0   : > { %s3214_s15 = smov %s2527_s18  ;;  %15 = sbr.rel (!%p13_p3) target bundleno = 3 (0x3), region = 70 }
 0x2e7   :  { %1719 = vsyncpa [#allocation3], 1 }
 0x2e8   :  { %1721 = vsyncpa [#allocation3 + $0x1], 1 }

</bundles_post_ra>
